<compile_context>
chip_gen: v5e
topology: v5e:2x2
jax: 0.10.0
libtpu: 0.0.40
codegen_flags: <defaults>
</compile_context>

<pallas_src>
import functools

import jax
import jax.numpy as jnp
from jax.experimental import pallas as pl
from jax.experimental.pallas import tpu as pltpu

# Plain Python float so it is inlined at trace time (never a captured constant).
NEG_INF = -1e18


def _attention_kernel(inp_ref, ctx_in_ref, bias_ref,
                      w_ctx_ref, b_ctx_ref, v_ref,
                      attn_ref, aw_ref, *, matmul_dtype, compute_dtype):
    """One batch tile of TB rows per grid step.

    inp_ref    : (TB, nhid) f32    hoisted Linear(inputs) + b_ctx (wrapper)
    ctx_in_ref : (TB, seq, ninp)   context block, HBM dtype
    bias_ref   : (TB, seq) f32     additive mask bias (0 or -1e18)
    w_ctx_ref  : (ninp, nhid)      pre-transposed Conv1d(k=1) weight, matmul_dtype
    b_ctx_ref  : (1, nhid) f32     Conv1d bias (added once to the final attn)
    v_ref      : (1, nhid) f32
    attn_ref   : (TB, nhid) f32
    aw_ref     : (TB, seq) f32
    """
    tb, seq, ninp = ctx_in_ref.shape
    nhid = w_ctx_ref.shape[1]
    f32 = jnp.float32

    # Context projection as ONE MXU matmul with M = TB*seq, f32 accumulation.
    # NOTE: the reshape is layout-free when seq is a sublane multiple (8 for
    # f32, 16 for bf16 context); otherwise it costs a VMEM relayout.
    # astype(...) is a no-op when dtypes already match (default f32 path).
    ctx_2d = ctx_in_ref[...].reshape(tb * seq, ninp).astype(matmul_dtype)
    ctx = jnp.dot(ctx_2d, w_ctx_ref[...],
                  preferred_element_type=jnp.float32).reshape(tb, seq, nhid)
    ctx_c = ctx.astype(compute_dtype)

    # tanh((inp + b_ctx) + W_ctx @ ctx): bias already folded into inp.
    inp_b = inp_ref[...].astype(compute_dtype)
    t = jnp.tanh(inp_b[:, None, :] + ctx_c)                        # (TB, seq, nhid)

    # attn_weight = <V, tanh(...)> over nhid: VPU mul + XLU lane reduce
    # (f32 accumulation), keeping the MXU free of M=1 matmuls.
    v_row = v_ref[...].astype(compute_dtype)
    aw = jnp.sum((t * v_row[None, :, :]).astype(f32), axis=-1)     # (TB, seq)

    # Additive mask bias == attn_weight[mask] = -1e18 (exact in f32).
    aw = aw + bias_ref[...]
    aw_ref[...] = aw.astype(aw_ref.dtype)

    # Softmax over seq with deferred normalization (skip forming normalized p).
    m = jnp.max(aw, axis=-1, keepdims=True)
    e = jnp.exp(aw - m)                                            # (TB, seq) f32
    denom = jnp.sum(e, axis=-1, keepdims=True)                     # (TB, 1)
    e_c = e.astype(compute_dtype)
    unnorm = jnp.sum((e_c[:, :, None] * ctx_c).astype(f32), axis=1)  # (TB, nhid)
    # Fully-masked rows give a uniform softmax (same as PyTorch's -1e18 fill).
    attn = unnorm * pl.reciprocal(denom, approx=False) + b_ctx_ref[...]
    attn_ref[...] = attn.astype(attn_ref.dtype)


def _vmem_plan():
    """Generation-aware VMEM budget (tile sizing) and scoped-VMEM limit."""
    cap = 64 * 1024 * 1024                       # conservative fallback (v7x-sized)
    try:
        info = pltpu.get_tpu_info()
        cap = int(getattr(info, "vmem_capacity_bytes", cap)) or cap
    except Exception:
        pass
    budget = int(cap * 0.45)                            # streamed blocks + temps
    limit = int(min(cap * 0.75, 100 * 1024 * 1024))     # ~96 MiB v5e/v6e, 48 MiB v7x
    return budget, limit


def _pick_batch_tile(B, seq, ninp, nhid, ctx_itemsize, comp_itemsize,
                     vmem_budget_bytes, max_tb=1024):
    """Largest sublane-aligned batch tile within the VMEM budget, capped so the
    grid keeps >=4 blocks (>=2 per TensorCore on v7x, DMA/compute overlap on
    single-TC parts) whenever the batch is big enough to split."""
    per_row = (
        2 * seq * ninp * ctx_itemsize            # context block (HBM dtype), double-buffered
        + 2 * seq * 4                            # mask bias, double-buffered
        + 2 * nhid * 4                           # hoisted input projection, double-buffered
        + 2 * nhid * 4 + 2 * seq * 4             # outputs, double-buffered
        + seq * nhid * 4                         # f32 matmul result
        + 3 * seq * nhid * comp_itemsize         # tanh / ctx_c / e*ctx intermediates
    )
    tb = max(int(vmem_budget_bytes // max(per_row, 1)), 1)
    tb = min(tb, max_tb)
    if B >= 32:
        tb = min(tb, -(-B // 4))                 # aim for >= 4 blocks
    elif B >= 16:
        tb = min(tb, -(-B // 2))                 # aim for >= 2 blocks
    if tb >= B:
        return B                                 # one block covering the full batch
    return max(8, (tb // 8) * 8)                 # TB < B must be a sublane multiple


def dot_product_attention(inputs, context, mask,
                          w_in, b_in, w_ctx, b_ctx, v,
                          *, matmul_dtype=jnp.float32, compute_dtype=jnp.float32):
    """Pallas wrapper.  Grid iterates over batch tiles of TB rows.

    matmul_dtype/compute_dtype = jnp.bfloat16 are recommended on v6e/v7x (feed
    bf16 `context` too to halve the dominant HBM stream); f32 defaults match
    PyTorch numerics.  Keep compute_dtype=f32 on v5e (no bf16 VPU/EUP path).
    """
    B, ninp = inputs.shape
    _, seq, _ = context.shape
    nhid = w_in.shape[0]
    f32 = jnp.float32

    # Hoisted input projection (tiny: B x nhid) with the Conv1d bias folded in,
    # so the kernel's hot loop has no per-element bias add.
    inp = inputs.astype(f32) @ w_in.astype(f32).T + b_in.astype(f32) + b_ctx.astype(f32)
    # Pre-transposed + pre-cast Conv1d(k=1) weight (grid-invariant block).
    w_ctx_t = jnp.asarray(w_ctx).T.astype(matmul_dtype)             # (ninp, nhid)
    b_ctx2 = b_ctx.astype(f32).reshape(1, nhid)
    v2 = v.astype(f32).reshape(1, nhid)
    # Additive mask bias: exactly reproduces attn_weight[mask] = -1e18.
    mask_bias = jnp.where(mask, NEG_INF, 0.0).astype(f32)           # (B, seq)

    vmem_budget, vmem_limit = _vmem_plan()
    TB = _pick_batch_tile(
        B, seq, ninp, nhid,
        ctx_itemsize=jnp.dtype(context.dtype).itemsize,
        comp_itemsize=jnp.dtype(compute_dtype).itemsize,
        vmem_budget_bytes=vmem_budget)
    # Ragged last block handled by Pallas partial-block semantics -> no jnp.pad
    # (and no extra HBM pass) over the big context tensor.
    n_blocks = pl.cdiv(B, TB)

    grid_spec = pltpu.PrefetchScalarGridSpec(
        num_scalar_prefetch=0,
        grid=(n_blocks,),
        in_specs=[
            pl.BlockSpec((TB, nhid), lambda b: (b, 0)),          # inp projection (+ b_ctx)
            pl.BlockSpec((TB, seq, ninp), lambda b: (b, 0, 0)),  # context block (HBM dtype)
            pl.BlockSpec((TB, seq), lambda b: (b, 0)),           # additive mask bias
            pl.BlockSpec((ninp, nhid), lambda b: (0, 0)),        # W_ctx^T (grid-invariant)
            pl.BlockSpec((1, nhid), lambda b: (0, 0)),           # b_ctx
            pl.BlockSpec((1, nhid), lambda b: (0, 0)),           # V
        ],
        out_specs=[
            pl.BlockSpec((TB, nhid), lambda b: (b, 0)),          # attn
            pl.BlockSpec((TB, seq), lambda b: (b, 0)),           # attn_weight
        ],
    )

    kernel = functools.partial(_attention_kernel,
                               matmul_dtype=matmul_dtype,
                               compute_dtype=compute_dtype)

    attn, attn_weight = pl.pallas_call(
        kernel,
        out_shape=(
            jax.ShapeDtypeStruct((B, nhid), jnp.float32),
            jax.ShapeDtypeStruct((B, seq), jnp.float32),
        ),
        grid_spec=grid_spec,
        compiler_params=pltpu.CompilerParams(
            dimension_semantics=("parallel",),   # megacore-shard batch blocks
            vmem_limit_bytes=vmem_limit,         # generation-aware headroom
        ),
    )(inp, context, mask_bias, w_ctx_t, b_ctx2, v2)

    return attn, attn_weight


def reference(inputs, context, mask, w_in, b_in, w_ctx, b_ctx, v):
    """Pure-JAX reference mirroring the PyTorch forward."""
    inp = inputs @ w_in.T + b_in                              # (B, nhid)
    ctx = jnp.einsum('bsi,hi->bsh', context, w_ctx) + b_ctx   # (B, seq, nhid)
    t = jnp.tanh(inp[:, None, :] + ctx)                       # (B, seq, nhid)
    aw = jnp.einsum('bsh,h->bs', t, v)                        # (B, seq)
    aw = jnp.where(mask, NEG_INF, aw)
    p = jax.nn.softmax(aw, axis=-1)
    attn = jnp.einsum('bsh,bs->bh', ctx, p)                   # (B, nhid)
    return attn, aw


if __name__ == "__main__":
    B, seq, ninp, nhid = 2, 8, 32, 32

    key = jax.random.PRNGKey(0)
    k = jax.random.split(key, 8)

    inputs = jax.random.normal(k[0], (B, ninp), dtype=jnp.float32)
    context = jax.random.normal(k[1], (B, seq, ninp), dtype=jnp.float32)
    # Mask a couple of positions per batch element.
    mask = jnp.zeros((B, seq), dtype=bool).at[:, -2:].set(True)

    # Deterministic parameter init (shapes follow the PyTorch module __init__).
    bound = 1.0 / jnp.sqrt(jnp.float32(ninp))
    w_in = jax.random.uniform(k[2], (nhid, ninp), minval=-bound, maxval=bound)
    b_in = jax.random.uniform(k[3], (nhid,), minval=-bound, maxval=bound)
    # Conv1d(ninp, nhid, 1) weight is (nhid, ninp, 1) -> kernel dim squeezed.
    w_ctx = jax.random.uniform(k[4], (nhid, ninp), minval=-bound, maxval=bound)
    b_ctx = jax.random.uniform(k[5], (nhid,), minval=-bound, maxval=bound)
    v = jax.random.uniform(k[6], (nhid,), minval=-1.0, maxval=1.0)

    attn, attn_weight = dot_product_attention(
        inputs, context, mask, w_in, b_in, w_ctx, b_ctx, v)
    jax.block_until_ready((attn, attn_weight))

    attn_ref, aw_ref = reference(
        inputs, context, mask, w_in, b_in, w_ctx, b_ctx, v)

    assert attn.shape == (B, nhid) and attn_weight.shape == (B, seq)
    assert jnp.allclose(attn, attn_ref, atol=1e-4, rtol=1e-4)
    assert jnp.allclose(attn_weight, aw_ref, atol=1e-4, rtol=1e-4)

    print("KERNEL_OK")
</pallas_src>

<mosaic_0001>
module attributes {stable_mosaic.version = 11 : i64} {
  func.func @_attention_kernel(%arg0: i32, %arg1: memref<2x32xf32, #tpu.memory_space<vmem>>, %arg2: memref<2x8x32xf32, #tpu.memory_space<vmem>>, %arg3: memref<2x8xf32, #tpu.memory_space<vmem>>, %arg4: memref<32x32xf32, #tpu.memory_space<vmem>>, %arg5: memref<1x32xf32, #tpu.memory_space<vmem>>, %arg6: memref<1x32xf32, #tpu.memory_space<vmem>>, %arg7: memref<2x32xf32, #tpu.memory_space<vmem>>, %arg8: memref<2x8xf32, #tpu.memory_space<vmem>>) attributes {dimension_semantics = [#tpu.dimension_semantics<parallel>], iteration_bounds = array<i64: 1>, scalar_prefetch = 0 : i64, scratch_operands = 0 : i64, tpu.core_type = #tpu.core_type<tc>, window_params = [{transform_indices = @transform_0, window_bounds = array<i64: 2, 32>}, {transform_indices = @transform_1, window_bounds = array<i64: 2, 8, 32>}, {transform_indices = @transform_2, window_bounds = array<i64: 2, 8>}, {pipeline_mode = #tpu.pipeline_mode<synchronous>, transform_indices = @transform_3, window_bounds = array<i64: 32, 32>}, {pipeline_mode = #tpu.pipeline_mode<synchronous>, transform_indices = @transform_4, window_bounds = array<i64: 1, 32>}, {pipeline_mode = #tpu.pipeline_mode<synchronous>, transform_indices = @transform_5, window_bounds = array<i64: 1, 32>}, {transform_indices = @transform_6, window_bounds = array<i64: 2, 32>}, {transform_indices = @transform_7, window_bounds = array<i64: 2, 8>}]} {
    %c0 = arith.constant 0 : index
    %c0_0 = arith.constant 0 : index
    %c0_1 = arith.constant 0 : index
    %0 = vector.load %arg2[%c0, %c0_0, %c0_1] : memref<2x8x32xf32, #tpu.memory_space<vmem>>, vector<2x8x32xf32>
    %1 = vector.shape_cast %0 : vector<2x8x32xf32> to vector<16x32xf32>
    %c0_2 = arith.constant 0 : index
    %c0_3 = arith.constant 0 : index
    %2 = vector.load %arg4[%c0_2, %c0_3] : memref<32x32xf32, #tpu.memory_space<vmem>>, vector<32x32xf32>
    %cst = arith.constant dense<0.000000e+00> : vector<16x32xf32>
    %3 = tpu.matmul %1, %2, %cst {dimension_numbers = #tpu.dot_dimension_numbers<[1], [0], [0], [1], [0, 0, 1, 1], [], []>} : vector<16x32xf32>, vector<32x32xf32>, vector<16x32xf32> -> vector<16x32xf32>
    %4 = vector.shape_cast %3 : vector<16x32xf32> to vector<2x8x32xf32>
    %c0_4 = arith.constant 0 : index
    %c0_5 = arith.constant 0 : index
    %5 = vector.load %arg1[%c0_4, %c0_5] : memref<2x32xf32, #tpu.memory_space<vmem>>, vector<2x32xf32>
    %6 = vector.shape_cast %5 : vector<2x32xf32> to vector<2x1x32xf32>
    %7 = vector.broadcast %6 : vector<2x1x32xf32> to vector<2x8x32xf32>
    %8 = arith.addf %7, %4 : vector<2x8x32xf32>
    %9 = math.tanh %8 : vector<2x8x32xf32>
    %c0_6 = arith.constant 0 : index
    %c0_7 = arith.constant 0 : index
    %10 = vector.load %arg6[%c0_6, %c0_7] : memref<1x32xf32, #tpu.memory_space<vmem>>, vector<1x32xf32>
    %11 = vector.shape_cast %10 : vector<1x32xf32> to vector<1x1x32xf32>
    %12 = vector.broadcast %11 : vector<1x1x32xf32> to vector<2x8x32xf32>
    %13 = arith.mulf %9, %12 : vector<2x8x32xf32>
    %cst_8 = arith.constant dense<0.000000e+00> : vector<2x8xf32>
    %14 = vector.multi_reduction <add>, %13, %cst_8 [2] : vector<2x8x32xf32> to vector<2x8xf32>
    %c0_9 = arith.constant 0 : index
    %c0_10 = arith.constant 0 : index
    %15 = vector.load %arg3[%c0_9, %c0_10] : memref<2x8xf32, #tpu.memory_space<vmem>>, vector<2x8xf32>
    %16 = arith.addf %14, %15 : vector<2x8xf32>
    %c0_11 = arith.constant 0 : index
    %c0_12 = arith.constant 0 : index
    %17 = vector.load %arg8[%c0_11, %c0_12] : memref<2x8xf32, #tpu.memory_space<vmem>>, vector<2x8xf32>
    tpu.vector_store %arg8[%c0_11, %c0_12], %16 {strides = array<i32>} : memref<2x8xf32, #tpu.memory_space<vmem>>, vector<2x8xf32>,
    %cst_13 = arith.constant dense<0xFF800000> : vector<2xf32>
    %18 = vector.multi_reduction <maximumf>, %16, %cst_13 [1] : vector<2x8xf32> to vector<2xf32>
    %19 = vector.shape_cast %18 : vector<2xf32> to vector<2x1xf32>
    %20 = vector.broadcast %19 : vector<2x1xf32> to vector<2x8xf32>
    %21 = arith.subf %16, %20 : vector<2x8xf32>
    %22 = math.exp %21 : vector<2x8xf32>
    %cst_14 = arith.constant dense<0.000000e+00> : vector<2xf32>
    %23 = vector.multi_reduction <add>, %22, %cst_14 [1] : vector<2x8xf32> to vector<2xf32>
    %24 = vector.shape_cast %23 : vector<2xf32> to vector<2x1xf32>
    %25 = vector.shape_cast %22 : vector<2x8xf32> to vector<2x8x1xf32>
    %26 = vector.broadcast %25 : vector<2x8x1xf32> to vector<2x8x32xf32>
    %27 = arith.mulf %26, %4 : vector<2x8x32xf32>
    %cst_15 = arith.constant dense<0.000000e+00> : vector<2x32xf32>
    %28 = vector.multi_reduction <add>, %27, %cst_15 [1] : vector<2x8x32xf32> to vector<2x32xf32>
    %29 = tpu.reciprocal %24 : vector<2x1xf32> -> vector<2x1xf32>
    %30 = vector.broadcast %29 : vector<2x1xf32> to vector<2x32xf32>
    %31 = arith.mulf %28, %30 : vector<2x32xf32>
    %c0_16 = arith.constant 0 : index
    %c0_17 = arith.constant 0 : index
    %32 = vector.load %arg5[%c0_16, %c0_17] : memref<1x32xf32, #tpu.memory_space<vmem>>, vector<1x32xf32>
    %33 = vector.broadcast %32 : vector<1x32xf32> to vector<2x32xf32>
    %34 = arith.addf %31, %33 : vector<2x32xf32>
    %c0_18 = arith.constant 0 : index
    %c0_19 = arith.constant 0 : index
    %35 = vector.load %arg7[%c0_18, %c0_19] : memref<2x32xf32, #tpu.memory_space<vmem>>, vector<2x32xf32>
    tpu.vector_store %arg7[%c0_18, %c0_19], %34 {strides = array<i32>} : memref<2x32xf32, #tpu.memory_space<vmem>>, vector<2x32xf32>,
    return
  }
  func.func @transform_0(%arg0: i32) -> (i32, i32) {
    %c0_i32 = arith.constant 0 : i32
    %c0_i32_0 = arith.constant 0 : i32
    return %arg0, %c0_i32 : i32, i32
  }
  func.func @transform_1(%arg0: i32) -> (i32, i32, i32) {
    %c0_i32 = arith.constant 0 : i32
    %c0_i32_0 = arith.constant 0 : i32
    %c0_i32_1 = arith.constant 0 : i32
    return %arg0, %c0_i32, %c0_i32_0 : i32, i32, i32
  }
  func.func @transform_2(%arg0: i32) -> (i32, i32) {
    %c0_i32 = arith.constant 0 : i32
    %c0_i32_0 = arith.constant 0 : i32
    return %arg0, %c0_i32 : i32, i32
  }
  func.func @transform_3(%arg0: i32) -> (i32, i32) {
    %c0_i32 = arith.constant 0 : i32
    %c0_i32_0 = arith.constant 0 : i32
    %c0_i32_1 = arith.constant 0 : i32
    return %c0_i32, %c0_i32_0 : i32, i32
  }
  func.func @transform_4(%arg0: i32) -> (i32, i32) {
    %c0_i32 = arith.constant 0 : i32
    %c0_i32_0 = arith.constant 0 : i32
    %c0_i32_1 = arith.constant 0 : i32
    return %c0_i32, %c0_i32_0 : i32, i32
  }
  func.func @transform_5(%arg0: i32) -> (i32, i32) {
    %c0_i32 = arith.constant 0 : i32
    %c0_i32_0 = arith.constant 0 : i32
    %c0_i32_1 = arith.constant 0 : i32
    return %c0_i32, %c0_i32_0 : i32, i32
  }
  func.func @transform_6(%arg0: i32) -> (i32, i32) {
    %c0_i32 = arith.constant 0 : i32
    %c0_i32_0 = arith.constant 0 : i32
    return %arg0, %c0_i32 : i32, i32
  }
  func.func @transform_7(%arg0: i32) -> (i32, i32) {
    %c0_i32 = arith.constant 0 : i32
    %c0_i32_0 = arith.constant 0 : i32
    return %arg0, %c0_i32 : i32, i32
  }
}

</mosaic_0001>

<bundles_post_ra>
// kernel: tpu_custom_call.1
= control target key start
LH: loop header
LB: loop body
LE: loop exit
PB: predicated region body
PF: predicated region fallthrough
CT: control target
= control target key end

     0   :  { %13 = vsyncpa [#allocation3], 0  ;;  %s575_s0 = inlined_call_operand.hbm [shape: f32[2,32], index: 0, kind: input, shape index: {}]   ;;  %s576_s1 = inlined_call_operand.hbm [shape: f32[2,8,32], index: 1, kind: input, shape index: {}]   ;;  %s577_s2 = inlined_call_operand.hbm [shape: f32[2,8], index: 2, kind: input, shape index: {}]   ;;  %s578_s3 = inlined_call_operand.hbm [shape: f32[32,32], index: 3, kind: input, shape index: {}]   ;;  %s579_s4 = inlined_call_operand.vmem [shape: f32[1,32], index: 4, kind: input, shape index: {}]   ;;  %s580_s5 = inlined_call_operand.vmem [shape: f32[1,32], index: 5, kind: input, shape index: {}]   ;;  %s581_s6 = inlined_call_operand.hbm [shape: f32[2,32], index: 6, kind: output, shape index: {0}]   ;;  %s582_s7 = inlined_call_operand.hbm [shape: f32[2,8], index: 7, kind: output, shape index: {1}]  }
   0x1   :  { %14 = vsyncpa [#allocation6], 0 }
   0x2   :  { %15 = vsyncpa [#allocation9], 0 }
   0x3   :  { %16 = vsyncpa [#allocation4], 0  ;;  %s33_s26 = sshll.u32 %s576_s1, 4  ;;  %s34_s26 = int_to_ptr.hbm [resolvable:$true] %s33_s26 }
   0x4   :  { %17 = vsyncpa [#allocation12], 0  ;;  %s482_s27 = smov [#allocation5]   ;;  %s23_s8 = sshll.u32 %s575_s0, 4  ;;  %s24_s8 = int_to_ptr.hbm [resolvable:$true] %s23_s8 }
   0x5   :  { %s35_s28 = sshll.u32 %s482_s27, 4  ;;  %s483_s9 = smov 128   ;;  %s36_s28 = int_to_ptr.vmem [resolvable:$true] %s35_s28 }
   0x6   :  { %s484_s10 = smov 8   ;;  %s485_s11 = smov [#allocation2]  }
   0x7   :  { %41 = dma.hbm_to_vmem [thread:$0]  %s34_s26, 256, %s36_s28, [#allocation6], %s483_s9, %s483_s9, %s484_s10  }
   0x8   :  { %s25_s12 = sshll.u32 %s485_s11, 4  ;;  %s47_s15 = sshll.u32 %s577_s2, 4  ;;  %s26_s12 = int_to_ptr.vmem [resolvable:$true] %s25_s12  ;;  %s48_s15 = int_to_ptr.hbm [resolvable:$true] %s47_s15 }
   0x9   :  { %28 = dma.hbm_to_vmem [thread:$0]  %s24_s8, 32, %s26_s12, [#allocation3]  }
   0xa   :  { %s57_s17 = sshll.u32 %s578_s3, 4  ;;  %s486_s18 = smov [#allocation7]   ;;  %s58_s17 = int_to_ptr.hbm [resolvable:$true] %s57_s17 }
   0xb   :  { %s49_s19 = sshll.u32 %s486_s18, 4  ;;  %s487_s0 = smov [#allocation8]   ;;  %s50_s19 = int_to_ptr.vmem [resolvable:$true] %s49_s19 }
   0xc   :  { %52 = dma.hbm_to_vmem [thread:$0]  %s48_s15, 32, %s50_s19, [#allocation6]  }
   0xd   :  { %s59_s20 = sshll.u32 %s487_s0, 4  ;;  %s60_s20 = int_to_ptr.vmem [resolvable:$true] %s59_s20 }
   0xe   :  { %65 = dma.hbm_to_vmem [thread:$0]  %s58_s17, 512, %s60_s20, [#allocation9], %s483_s9, %s483_s9, %s484_s10  }
   0xf   :  { %472 = dma.done.wait [#allocation3], 32  }
  0x10   :  { %473 = vsyncadd [#allocation3], 4294967264 }
  0x11   :  { %474 = dma.done.wait [#allocation6], 288  }
  0x12   :  { %475 = vsyncadd [#allocation6], 4294967008 }
  0x13   :  { %476 = dma.done.wait [#allocation9], 512  }
  0x14   :  { %477 = vsyncadd [#allocation9], 4294966784  ;;  %v148_v0 = vlaneseq  ;;  %v91_v2 = vld [vmem:[#allocation8 + $0x18] sm:$0xff]  ;;  %v90_v3 = vld [vmem:[#allocation8 + $0x10] sm:$0xff]  ;;  %vm92_vm0 = vcmask 261120   ;;  %v488_v26 = vmov 0  }
  0x15   :  { %111 = vmatpush.msra.mxu0 %v91_v2  ;;  %299 = vmatpush.msra.mxu1 %v91_v2  ;;  %v89_v4 = vld [vmem:[#allocation8 + $0x8] sm:$0xff]  ;;  %v88_v5 = vld [vmem:[#allocation8] sm:$0xff]  ;;  %v87_v7 = vld [vmem:[#allocation5 + $0x8] sm:$0xff]  ;;  %vm177_vm1 = vcmask 1041409   ;;  %vm180_vm2 = vcmask 58368   ;;  %s280_s24 = sshll.u32 %s582_s7, 4  ;;  %s281_s24 = int_to_ptr.hbm [resolvable:$true] %s280_s24 }
  0x16   :  { %v149_v1 = vshrl.u32 %v148_v0, 7  ;;  %v86_v6 = vld [vmem:[#allocation5] sm:$0xff]  ;;  %v145_v8 = vld [vmem:[#allocation7] sm:$0x3]  ;;  %v122_v11 = vld [vmem:[#allocation2] sm:$0x3]  ;;  %313 = vset.pattern.permute.xlu2 %v488_v26  ;;  %315 = vset.pattern.permute.xlu0 %v488_v26 }
  0x17   :  { %112 = vmatpush.msra.mxu0 %v90_v3  ;;  %300 = vmatpush.msra.mxu1 %v90_v3  ;;  %v147_v9 = vperm.slane %v145_v8, 0  ;;  %v154_v10 = vperm.slane %v145_v8, 1  ;;  %v124_v12 = vrot.slane %v122_v11, 1  ;;  %v125_v13 = vperm.slane %v122_v11, 0  ;;  %v316_v19 = vld [vmem:[%s580_s5] ss:$0 sm:$0xff] }
  0x18   :  { %312 = vset.pattern.permute.xlu1 %v149_v1  ;;  %v174_v34 = vand.u32 127, %v148_v0  ;;  %s489_s5 = smov [#allocation11]   ;;  %s490_s26 = smov [#allocation10]   ;;  %vm260_vm7 = vcmask 254976  }
  0x19   :  { %113 = vmatpush.msra.mxu0 %v89_v4  ;;  %301 = vmatpush.msra.mxu1 %v89_v4  ;;  %v126_v14 = vperm.slane %v124_v12, 0  ;;  %s278_s21 = sshll.u32 %s489_s5, 4  ;;  %s267_s27 = sshll.u32 %s490_s26, 4  ;;  %s279_s21 = int_to_ptr.vmem [resolvable:$true] %s278_s21  ;;  %s268_s27 = int_to_ptr.vmem [resolvable:$true] %s267_s27 }
  0x1a   :  { %s269_s30 = sshll.u32 %s581_s6, 4  ;;  %s270_s30 = int_to_ptr.hbm [resolvable:$true] %s269_s30 }
  0x1b   :  { %114 = vmatpush.msra.mxu0 %v88_v5  ;;  %302 = vmatpush.msra.mxu1 %v88_v5 }
  0x1c   :  { %297 = vmatmul.msk.f32.vlgmr.msra.gmra.mxu0 %vm92_vm0, %v86_v6  ;;  %298 = vmatmul.msk.f32.vlgmr.msra.gmra.mxu1 %vm92_vm0, %v87_v7 }
  0x20   :  { %152 = vperm.xlu1 %312, %v147_v9  }
  0x28   :  { %159 = vperm.xlu1 %312, %v154_v10  }
  0x30   :  { %314 = vset.pattern.permute.xlu1 %v488_v26 }
  0x92   :  { %v153_v27 = vpop.permute.xlu1 %152 }
  0x99   :  { %v545_v15 = vpop.f32.mrf.mxu0  ;;  %v547_v16 = vpop.f32.mrf.mxu1 }
  0x9a   :  { %v129_v17 = vadd.f32 %v125_v13, %v545_v15  ;;  %v130_v18 = vadd.f32 %v126_v14, %v547_v16  ;;  %v160_v30 = vpop.permute.xlu1 %159 }
  0x9c   :  { %318 = vtanh.f32 %v129_v17 }
  0x9d   :  { %320 = vtanh.f32 %v130_v18 }
  0xa2   :  { %v319_v20 = vpop.eup %318 }
  0xa3   :  { %v137_v21 = vmul.f32 %v319_v20, %v316_v19  ;;  %v321_v22 = vpop.eup %320 }
  0xa4   :  { %v138_v24 = vmul.f32 %v321_v22, %v316_v19 }
  0xa5   :  { %v139_v23 = vsel %vm92_vm0, %v137_v21, 0.0  ;;  %v317_v21 = vld [vmem:[%s579_s4] ss:$0 sm:$0xff] }
  0xa6   :  { %140 = vadd.xlane.f32.xlu0 %v139_v23  ;;  %v142_v25 = vsel %vm92_vm0, %v138_v24, 0.0 }
  0xae   :  { %143 = vadd.xlane.f32.xlu0 %v142_v25 }
 0x119   :  { %v141_v28 = vpop.xlane.xlu0 %140 }
 0x11a   :  { %v163_v29 = vadd.f32 %v153_v27, %v141_v28 }
 0x11c   :  { %168 = vperm.xlu2 %313, %v163_v29  }
 0x121   :  { %v144_v31 = vpop.xlane.xlu0 %143 }
 0x122   :  { %v164_v32 = vadd.f32 %v160_v30, %v144_v31 }
 0x124   :  { %171 = vperm.xlu2 %313, %v164_v32  }
 0x176   :  { %v169_v33 = vpop.permute.xlu2 %168 }
 0x177   :  { %v175_v36 = vperm.slane %v169_v33, %v174_v34 }
 0x17e   :  { %v172_v35 = vpop.permute.xlu2 %171 }
 0x17f   :  { %v176_v37 = vperm.slane %v172_v35, %v174_v34 }
 0x181   :  { %v178_v38 = vsel %vm177_vm1, %v176_v37, %v175_v36 }
 0x182   :  { %v182_v39 = vsel %vm180_vm2, %v178_v38, -inf  ;;  %181 = vst.msk [vmem:[#allocation11] sm:$0x3] %vm180_vm2, %v178_v38 }
 0x183   :  { %183 = vmax.xlane.f32.xlu0 %v182_v39  ;;  %283 = dma.vmem_to_hbm [thread:$0]  %s279_s21, 32, %s281_s24, [#allocation12]  }
 0x1f6   :  { %v184_v40 = vpop.xlane.xlu0 %183 }
 0x1f7   :  { %v186_v41 = vperm.slane %v184_v40, 0  ;;  %v187_v42 = vperm.slane %v184_v40, 1 }
 0x1f9   :  { %v190_v43 = vsub.f32 %v163_v29, %v186_v41  ;;  %v191_v44 = vsub.f32 %v164_v32, %v187_v42 }
 0x1fb   :  { %v192_v45 = vmul.f32 1.442695, %v190_v43  ;;  %v194_v46 = vmul.f32 1.442695, %v191_v44 }
 0x1fd   :  { %322 = vpow2.f32 %v192_v45 }
 0x1fe   :  { %324 = vpow2.f32 %v194_v46 }
 0x203   :  { %v323_v47 = vpop.eup %322 }
 0x204   :  { %v325_v48 = vpop.eup %324  ;;  %199 = vperm.xlu1 %314, %v323_v47  }
 0x205   :  { %202 = vperm.xlu2 %313, %v325_v48  }
 0x25f   :  { %v203_v49 = vpop.permute.xlu2 %202 }
 0x260   :  { %v205_v51 = vperm.slane %v203_v49, %v174_v34  ;;  %v214_v55 = vmul.f32 %v203_v49, %v547_v16 }
 0x262   :  { %v222_v57 = vsel %vm92_vm0, %v214_v55, 0.0 }
 0x263   :  { %v223_v59 = vrot.slane %v222_v57, 4 }
 0x265   :  { %v224_v62 = vadd.f32 %v223_v59, %v222_v57 }
 0x267   :  { %v225_v0 = vrot.slane %v224_v62, 2 }
 0x269   :  { %v226_v4 = vadd.f32 %v225_v0, %v224_v62 }
 0x26b   :  { %v227_v10 = vrot.slane %v226_v4, 1 }
 0x26d   :  { %v228_v16 = vadd.f32 %v227_v10, %v226_v4 }
 0x276   :  { %v200_v50 = vpop.permute.xlu1 %199 }
 0x277   :  { %v204_v52 = vperm.slane %v200_v50, %v174_v34  ;;  %v213_v56 = vmul.f32 %v200_v50, %v545_v15 }
 0x279   :  { %v206_v53 = vsel %vm177_vm1, %v205_v51, %v204_v52  ;;  %v215_v58 = vsel %vm92_vm0, %v213_v56, 0.0 }
 0x27a   :  { %v208_v54 = vsel %vm180_vm2, %v206_v53, 0.0  ;;  %v216_v60 = vrot.slane %v215_v58, 4 }
 0x27b   :  { %209 = vadd.xlane.f32.xlu0 %v208_v54 }
 0x27c   :  { %v217_v63 = vadd.f32 %v216_v60, %v215_v58 }
 0x27e   :  { %v218_v1 = vrot.slane %v217_v63, 2 }
 0x280   :  { %v219_v5 = vadd.f32 %v218_v1, %v217_v63 }
 0x282   :  { %v220_v11 = vrot.slane %v219_v5, 1 }
 0x284   :  { %v221_v17 = vadd.f32 %v220_v11, %v219_v5 }
 0x2ee   :  { %v210_v61 = vpop.xlane.xlu0 %209 }
 0x2ef   :  { %326 = vrcp.f32 %v210_v61  ;;  %v240_v7 = vand.u32 2147483648, %v210_v61  ;;  %v238_v9 = vand.u32 2147483647, %v210_v61  ;;  %vm234_vm4 = vweird.f32 %v210_v61 }
 0x2f1   :  { %v241_v13 = vor.u32 1.1754944e-38, %v240_v7  ;;  %vm239_vm6 = vcmp.eq.f32.partialorder %v238_v9, 8.507059e+37 }
 0x2f5   :  { %v327_v2 = vpop.eup %326 }
 0x2f6   :  { %v230_v3 = vmul.f32 %v327_v2, %v210_v61  ;;  %vm235_vm3 = vweird.f32 %v327_v2 }
 0x2f7   :  { %vm236_vm5 = vmor %vm234_vm4, %vm235_vm3 }
 0x2f8   :  { %v231_v6 = vsub.f32 1.0, %v230_v3 }
 0x2fa   :  { %v232_v8 = vmul.f32 %v327_v2, %v231_v6 }
 0x2fc   :  { %v233_v12 = vadd.f32 %v327_v2, %v232_v8 }
 0x2fe   :  { %v237_v14 = vsel %vm236_vm5, %v327_v2, %v233_v12 }
 0x2ff   :  { %v242_v15 = vsel %vm239_vm6, %v241_v13, %v237_v14 }
 0x300   :  { %v244_v18 = vrot.slane %v242_v15, 1  ;;  %v247_v19 = vmul.f32 %v242_v15, %v221_v17 }
 0x302   :  { %v248_v20 = vmul.f32 %v244_v18, %v228_v16  ;;  %v253_v23 = vadd.f32 %v317_v21, %v247_v19 }
 0x304   :  { %v254_v22 = vadd.f32 %v317_v21, %v248_v20 }
 0x306   :  { %v257_v24 = vrot.slane %v254_v22, 7 }
 0x308   :  { %v258_v25 = vsel %vm177_vm1, %v257_v24, %v253_v23 }
 0x309   :  { %261 = vst.msk [vmem:[#allocation10] sm:$0x3] %vm260_vm7, %v258_v25 }
 0x30a   :  { %272 = dma.vmem_to_hbm [thread:$0]  %s268_s27, 32, %s270_s30, [#allocation4]  }
 0x30b   :  { %478 = dma.done.wait [#allocation4], 32  }
 0x30c   :  { %479 = vsyncadd [#allocation4], 4294967264 }
 0x30d   :  { %480 = dma.done.wait [#allocation12], 32  }
 0x30e   :  { %481 = vsyncadd [#allocation12], 4294967264 }
 0x30f   :  { %292 = vsyncpa [#allocation3], 1 }
 0x310   :  { %293 = vsyncpa [#allocation6], 1 }
 0x311   :  { %294 = vsyncpa [#allocation9], 1 }
 0x312   :  { %295 = vsyncpa [#allocation4], 1 }
 0x313   :  { %296 = vsyncpa [#allocation12], 1 }

</bundles_post_ra>
